<compile_context>
chip_gen: v7x
topology: tpu7x:2x2x1
jax: 0.10.0
libtpu: 0.0.40
codegen_flags: <defaults>
</compile_context>

<pallas_src>
import functools

import jax
import jax.numpy as jnp
import numpy as np
from jax.experimental import pallas as pl
from jax.experimental.pallas import tpu as pltpu


def _round_up(x, m):
    return (x + m - 1) // m * m


def _fused_rgcn_kernel(adj_ref, feats_ref, w_ref, bias_ref, out_ref,
                       *, num_layers, num_rels, dp):
    """Entire EntityClassify forward in one invocation (all operands VMEM resident).

    adj_ref   : (N, R*N)      f32  per-relation adjacency (edge norms folded in),
                                   relations concatenated along the lane axis
    feats_ref : (N, Dp)       f32  input node features (lane-padded with zeros)
    w_ref     : (L, Dp, R*Dp) bf16 per-layer folded weights W_r = sum_b coeff[r,b]*bases[b],
                                   relations concatenated along the output-lane axis
    bias_ref  : (L, 1, Dp)    f32  per-layer bias (lane-padded with zeros)
    out_ref   : (N, Dp)       f32  final-layer activations
    """
    adj = adj_ref[...]                            # (N, R*N) f32, loaded once
    h = feats_ref[...]                            # (N, Dp)  f32
    for l in range(num_layers):                   # unrolled: L is tiny (3)
        # One wide MXU matmul per layer: h @ [W_0 | W_1 | ... | W_{R-1}]  (bf16 in, f32 acc).
        hb = jnp.dot(h.astype(jnp.bfloat16), w_ref[l],
                     preferred_element_type=jnp.float32)             # (N, R*Dp) f32
        # Sublane-stack the per-relation chunks (static lane slices, lane-aligned, no
        # XLU relayout) so the R aggregation matmuls collapse into one long-K contraction.
        hw = jnp.concatenate(
            [hb[:, r * dp:(r + 1) * dp] for r in range(num_rels)], axis=0)  # (R*N, Dp)
        acc = jnp.dot(adj, hw, preferred_element_type=jnp.float32) + bias_ref[l]
        if l != num_layers - 1:
            acc = jnp.maximum(acc, 0.0)           # F.relu
        h = acc
    out_ref[...] = h


def pack_entity_classify(params, adj, lane=128):
    """One-time layout prep (hoisted out of the per-call forward).

    params: list (one per layer) of dicts with
        'bases' (B, Din, Dout), 'coeff' (R, B), 'bias' (Dout,)
    adj   : (R, N, N) dense per-relation adjacency, A[r, dst, src] = edge norm,
            densely encoding the DGL block:  out[d] = sum_r A[r] @ (h @ W_r)
    """
    R, N, _ = adj.shape
    L = len(params)
    dims = [(p["bases"].shape[1], p["bases"].shape[2]) for p in params]
    Dp = max(lane, *[_round_up(d, lane) for pair in dims for d in pair])

    # Relations concatenated along the lane axis: adj_cat[:, r*N:(r+1)*N] = A[r].
    adj_cat = jnp.concatenate([adj[r] for r in range(R)], axis=1).astype(jnp.float32)

    # Fold basis coefficients into per-relation weights, zero-pad to lane-dense shapes,
    # concatenate relations along the output-lane axis and stack layers.
    w_cat = np.zeros((L, Dp, R * Dp), np.float32)
    bias = np.zeros((L, 1, Dp), np.float32)
    for l, p in enumerate(params):
        din, dout = dims[l]
        w_rel = np.einsum("rb,bde->rde",
                          np.asarray(p["coeff"], np.float32),
                          np.asarray(p["bases"], np.float32))
        for r in range(R):
            w_cat[l, :din, r * Dp:r * Dp + dout] = w_rel[r]
        bias[l, 0, :dout] = np.asarray(p["bias"], np.float32)

    return {
        "adj_cat": adj_cat,                                # (N, R*N)       f32
        "w_cat": jnp.asarray(w_cat, dtype=jnp.bfloat16),   # (L, Dp, R*Dp)  bf16
        "bias": jnp.asarray(bias),                         # (L, 1, Dp)     f32
        "meta": {"num_layers": L, "num_rels": R, "dp": Dp, "out_dim": dims[-1][1]},
    }


@functools.partial(jax.jit, static_argnames=("num_layers", "num_rels", "dp", "out_dim"))
def entity_classify_forward(adj_cat, w_cat, bias, feats, *,
                            num_layers, num_rels, dp, out_dim):
    """EntityClassify.forward as one fused Pallas call (operands pre-packed)."""
    n = adj_cat.shape[0]
    din = feats.shape[1]
    feats_p = jnp.zeros((n, dp), jnp.float32).at[:, :din].set(feats.astype(jnp.float32))

    kernel = functools.partial(_fused_rgcn_kernel, num_layers=num_layers,
                               num_rels=num_rels, dp=dp)
    out_p = pl.pallas_call(
        kernel,
        out_shape=jax.ShapeDtypeStruct((n, dp), jnp.float32),
        in_specs=[
            pl.BlockSpec(memory_space=pltpu.MemorySpace.VMEM),  # adj_cat
            pl.BlockSpec(memory_space=pltpu.MemorySpace.VMEM),  # feats
            pl.BlockSpec(memory_space=pltpu.MemorySpace.VMEM),  # w_cat
            pl.BlockSpec(memory_space=pltpu.MemorySpace.VMEM),  # bias
        ],
        out_specs=pl.BlockSpec(memory_space=pltpu.MemorySpace.VMEM),
        compiler_params=pltpu.CompilerParams(vmem_limit_bytes=32 * 1024 * 1024),
    )(adj_cat, feats_p, w_cat, bias)
    return out_p[:, :out_dim]


def _reference_forward(params, adj, feats):
    """Pure-JAX reference mirroring the kernel numerics.

    Module math:  W_r = sum_b coeff[r,b] * bases[b];  out = sum_r A_r @ (h @ W_r) + bias;
    relu on all but the last layer.  Weights are cast to bf16 for the MXU feature
    transform (f32 accumulation); adjacency and all accumulation stay f32.
    NOTE: versus the pure-f32 PyTorch module, bf16 weight rounding relaxes agreement
    to ~1e-3 relative.
    """
    adj32 = adj.astype(jnp.float32)
    h = feats.astype(jnp.float32)
    L = len(params)
    for i, p in enumerate(params):
        w_rel = jnp.einsum("rb,bde->rde", p["coeff"].astype(jnp.float32),
                           p["bases"].astype(jnp.float32)).astype(jnp.bfloat16)
        hw = jnp.einsum("nd,rde->rne", h.astype(jnp.bfloat16), w_rel,
                        preferred_element_type=jnp.float32)
        out = jnp.einsum("rnm,rme->ne", adj32, hw, preferred_element_type=jnp.float32)
        out = out + p["bias"].astype(jnp.float32)[None, :]
        if i != L - 1:
            out = jnp.maximum(out, 0.0)
        h = out
    return h


def _init_layer_params(key, in_dim, out_dim, num_rels, num_bases):
    kb, kc, kbias = jax.random.split(key, 3)
    bases = jax.random.normal(kb, (num_bases, in_dim, out_dim), jnp.float32)
    bases = bases * (1.0 / np.sqrt(in_dim))
    coeff = jax.random.normal(kc, (num_rels, num_bases), jnp.float32)
    bias = 0.01 * jax.random.normal(kbias, (out_dim,), jnp.float32)
    return {"bases": bases, "coeff": coeff, "bias": bias}


if __name__ == "__main__":
    # Small, module-consistent sizes.
    N = 64            # number of nodes
    H_DIM = 32        # hidden dim
    OUT_DIM = 16      # output (num classes) dim
    NUM_RELS = 3
    NUM_BASES = 2
    NUM_HIDDEN_LAYERS = 1   # total layers = 1 + NUM_HIDDEN_LAYERS + 1 = 3
    E = 256           # number of edges

    key = jax.random.PRNGKey(0)
    k_src, k_dst, k_et, k_norm, k_feat, k_par = jax.random.split(key, 6)

    # Synthetic graph (same graph reused for every layer, as in the blocks=None path).
    src = np.asarray(jax.random.randint(k_src, (E,), 0, N))
    dst = np.asarray(jax.random.randint(k_dst, (E,), 0, N))
    etype = np.asarray(jax.random.randint(k_et, (E,), 0, NUM_RELS))
    norm = np.asarray(jax.random.uniform(k_norm, (E,), jnp.float32, 0.1, 1.0))

    adj_np = np.zeros((NUM_RELS, N, N), dtype=np.float32)
    np.add.at(adj_np, (etype, dst, src), norm)   # A[r, dst, src] += edge norm
    adj = jnp.asarray(adj_np)

    feats = jax.random.normal(k_feat, (N, H_DIM), jnp.float32)

    # Layer dims: h->h (relu), h->h (relu), h->out (no activation).
    layer_dims = [(H_DIM, H_DIM)] + [(H_DIM, H_DIM)] * NUM_HIDDEN_LAYERS \
                 + [(H_DIM, OUT_DIM)]
    pkeys = jax.random.split(k_par, len(layer_dims))
    params = [
        _init_layer_params(pk, din, dout, NUM_RELS, NUM_BASES)
        for pk, (din, dout) in zip(pkeys, layer_dims)
    ]

    # One-time layout prep (coeff fold, adjacency/weight concat, lane padding).
    packed = pack_entity_classify(params, adj)
    meta = packed["meta"]

    out = entity_classify_forward(packed["adj_cat"], packed["w_cat"], packed["bias"],
                                  feats, **meta)
    out = jax.block_until_ready(out)

    ref = jax.block_until_ready(_reference_forward(params, adj, feats))
    assert out.shape == (N, OUT_DIM), out.shape
    # Same bf16 weight rounding + f32 accumulation on both sides; only the coeff-fold
    # rounding and contraction ordering differ, so a tight tolerance holds.
    np.testing.assert_allclose(np.asarray(out), np.asarray(ref), rtol=2e-3, atol=2e-3)

    print("KERNEL_OK")
</pallas_src>

<mosaic_0001>
module attributes {stable_mosaic.version = 11 : i64} {
  func.func @_fused_rgcn_kernel(%arg0: memref<64x192xf32, #tpu.memory_space<vmem>>, %arg1: memref<64x128xf32, #tpu.memory_space<vmem>>, %arg2: memref<3x128x384xbf16, #tpu.memory_space<vmem>>, %arg3: memref<3x1x128xf32, #tpu.memory_space<vmem>>, %arg4: memref<64x128xf32, #tpu.memory_space<vmem>>) attributes {dimension_semantics = [], scalar_prefetch = 0 : i64, scratch_operands = 0 : i64, tpu.core_type = #tpu.core_type<tc>} {
    %c0 = arith.constant 0 : index
    %c0_0 = arith.constant 0 : index
    %0 = vector.load %arg0[%c0, %c0_0] : memref<64x192xf32, #tpu.memory_space<vmem>>, vector<64x192xf32>
    %c0_1 = arith.constant 0 : index
    %c0_2 = arith.constant 0 : index
    %1 = vector.load %arg1[%c0_1, %c0_2] : memref<64x128xf32, #tpu.memory_space<vmem>>, vector<64x128xf32>
    %2 = arith.truncf %1 : vector<64x128xf32> to vector<64x128xbf16>
    %c0_3 = arith.constant 0 : index
    %c0_4 = arith.constant 0 : index
    %c0_5 = arith.constant 0 : index
    %3 = vector.load %arg2[%c0_3, %c0_4, %c0_5] : memref<3x128x384xbf16, #tpu.memory_space<vmem>>, vector<1x128x384xbf16>
    %4 = vector.shape_cast %3 : vector<1x128x384xbf16> to vector<128x384xbf16>
    %cst = arith.constant dense<0.000000e+00> : vector<64x384xf32>
    %5 = tpu.matmul %2, %4, %cst {dimension_numbers = #tpu.dot_dimension_numbers<[1], [0], [0], [1], [0, 0, 1, 1], [], []>} : vector<64x128xbf16>, vector<128x384xbf16>, vector<64x384xf32> -> vector<64x384xf32>
    %6 = vector.extract_strided_slice %5 {offsets = [0, 0], sizes = [64, 128], strides = [1, 1]} : vector<64x384xf32> to vector<64x128xf32>
    %7 = vector.extract_strided_slice %5 {offsets = [0, 128], sizes = [64, 128], strides = [1, 1]} : vector<64x384xf32> to vector<64x128xf32>
    %8 = vector.extract_strided_slice %5 {offsets = [0, 256], sizes = [64, 128], strides = [1, 1]} : vector<64x384xf32> to vector<64x128xf32>
    %9 = tpu.concatenate %6, %7, %8 in 0 : vector<64x128xf32>, vector<64x128xf32>, vector<64x128xf32> -> vector<192x128xf32>
    %cst_6 = arith.constant dense<0.000000e+00> : vector<64x128xf32>
    %10 = tpu.matmul %0, %9, %cst_6 {dimension_numbers = #tpu.dot_dimension_numbers<[1], [0], [0], [1], [0, 0, 1, 1], [], []>} : vector<64x192xf32>, vector<192x128xf32>, vector<64x128xf32> -> vector<64x128xf32>
    %c0_7 = arith.constant 0 : index
    %c0_8 = arith.constant 0 : index
    %c0_9 = arith.constant 0 : index
    %11 = vector.load %arg3[%c0_7, %c0_8, %c0_9] : memref<3x1x128xf32, #tpu.memory_space<vmem>>, vector<1x1x128xf32>
    %12 = vector.shape_cast %11 : vector<1x1x128xf32> to vector<1x128xf32>
    %13 = vector.broadcast %12 : vector<1x128xf32> to vector<64x128xf32>
    %14 = arith.addf %10, %13 : vector<64x128xf32>
    %cst_10 = arith.constant 0.000000e+00 : f32
    %15 = vector.broadcast %cst_10 : f32 to vector<64x128xf32>
    %16 = arith.maximumf %14, %15 : vector<64x128xf32>
    %17 = arith.truncf %16 : vector<64x128xf32> to vector<64x128xbf16>
    %c1 = arith.constant 1 : index
    %c0_11 = arith.constant 0 : index
    %c0_12 = arith.constant 0 : index
    %18 = vector.load %arg2[%c1, %c0_11, %c0_12] : memref<3x128x384xbf16, #tpu.memory_space<vmem>>, vector<1x128x384xbf16>
    %19 = vector.shape_cast %18 : vector<1x128x384xbf16> to vector<128x384xbf16>
    %cst_13 = arith.constant dense<0.000000e+00> : vector<64x384xf32>
    %20 = tpu.matmul %17, %19, %cst_13 {dimension_numbers = #tpu.dot_dimension_numbers<[1], [0], [0], [1], [0, 0, 1, 1], [], []>} : vector<64x128xbf16>, vector<128x384xbf16>, vector<64x384xf32> -> vector<64x384xf32>
    %21 = vector.extract_strided_slice %20 {offsets = [0, 0], sizes = [64, 128], strides = [1, 1]} : vector<64x384xf32> to vector<64x128xf32>
    %22 = vector.extract_strided_slice %20 {offsets = [0, 128], sizes = [64, 128], strides = [1, 1]} : vector<64x384xf32> to vector<64x128xf32>
    %23 = vector.extract_strided_slice %20 {offsets = [0, 256], sizes = [64, 128], strides = [1, 1]} : vector<64x384xf32> to vector<64x128xf32>
    %24 = tpu.concatenate %21, %22, %23 in 0 : vector<64x128xf32>, vector<64x128xf32>, vector<64x128xf32> -> vector<192x128xf32>
    %cst_14 = arith.constant dense<0.000000e+00> : vector<64x128xf32>
    %25 = tpu.matmul %0, %24, %cst_14 {dimension_numbers = #tpu.dot_dimension_numbers<[1], [0], [0], [1], [0, 0, 1, 1], [], []>} : vector<64x192xf32>, vector<192x128xf32>, vector<64x128xf32> -> vector<64x128xf32>
    %c1_15 = arith.constant 1 : index
    %c0_16 = arith.constant 0 : index
    %c0_17 = arith.constant 0 : index
    %26 = vector.load %arg3[%c1_15, %c0_16, %c0_17] : memref<3x1x128xf32, #tpu.memory_space<vmem>>, vector<1x1x128xf32>
    %27 = vector.shape_cast %26 : vector<1x1x128xf32> to vector<1x128xf32>
    %28 = vector.broadcast %27 : vector<1x128xf32> to vector<64x128xf32>
    %29 = arith.addf %25, %28 : vector<64x128xf32>
    %cst_18 = arith.constant 0.000000e+00 : f32
    %30 = vector.broadcast %cst_18 : f32 to vector<64x128xf32>
    %31 = arith.maximumf %29, %30 : vector<64x128xf32>
    %32 = arith.truncf %31 : vector<64x128xf32> to vector<64x128xbf16>
    %c2 = arith.constant 2 : index
    %c0_19 = arith.constant 0 : index
    %c0_20 = arith.constant 0 : index
    %33 = vector.load %arg2[%c2, %c0_19, %c0_20] : memref<3x128x384xbf16, #tpu.memory_space<vmem>>, vector<1x128x384xbf16>
    %34 = vector.shape_cast %33 : vector<1x128x384xbf16> to vector<128x384xbf16>
    %cst_21 = arith.constant dense<0.000000e+00> : vector<64x384xf32>
    %35 = tpu.matmul %32, %34, %cst_21 {dimension_numbers = #tpu.dot_dimension_numbers<[1], [0], [0], [1], [0, 0, 1, 1], [], []>} : vector<64x128xbf16>, vector<128x384xbf16>, vector<64x384xf32> -> vector<64x384xf32>
    %36 = vector.extract_strided_slice %35 {offsets = [0, 0], sizes = [64, 128], strides = [1, 1]} : vector<64x384xf32> to vector<64x128xf32>
    %37 = vector.extract_strided_slice %35 {offsets = [0, 128], sizes = [64, 128], strides = [1, 1]} : vector<64x384xf32> to vector<64x128xf32>
    %38 = vector.extract_strided_slice %35 {offsets = [0, 256], sizes = [64, 128], strides = [1, 1]} : vector<64x384xf32> to vector<64x128xf32>
    %39 = tpu.concatenate %36, %37, %38 in 0 : vector<64x128xf32>, vector<64x128xf32>, vector<64x128xf32> -> vector<192x128xf32>
    %cst_22 = arith.constant dense<0.000000e+00> : vector<64x128xf32>
    %40 = tpu.matmul %0, %39, %cst_22 {dimension_numbers = #tpu.dot_dimension_numbers<[1], [0], [0], [1], [0, 0, 1, 1], [], []>} : vector<64x192xf32>, vector<192x128xf32>, vector<64x128xf32> -> vector<64x128xf32>
    %c2_23 = arith.constant 2 : index
    %c0_24 = arith.constant 0 : index
    %c0_25 = arith.constant 0 : index
    %41 = vector.load %arg3[%c2_23, %c0_24, %c0_25] : memref<3x1x128xf32, #tpu.memory_space<vmem>>, vector<1x1x128xf32>
    %42 = vector.shape_cast %41 : vector<1x1x128xf32> to vector<1x128xf32>
    %43 = vector.broadcast %42 : vector<1x128xf32> to vector<64x128xf32>
    %44 = arith.addf %40, %43 : vector<64x128xf32>
    %c0_26 = arith.constant 0 : index
    %c0_27 = arith.constant 0 : index
    %45 = vector.load %arg4[%c0_26, %c0_27] : memref<64x128xf32, #tpu.memory_space<vmem>>, vector<64x128xf32>
    tpu.vector_store %arg4[%c0_26, %c0_27], %44 {strides = array<i32>} : memref<64x128xf32, #tpu.memory_space<vmem>>, vector<64x128xf32>,
    return
  }
}

</mosaic_0001>

<bundles_post_ra>
// kernel: entity_classify_forward.1
= control target key start
LH: loop header
LB: loop body
LE: loop exit
PB: predicated region body
PF: predicated region fallthrough
CT: control target
= control target key end

     0   :  { %9 = vsyncpa [#allocation3], 0  ;;  %s1798_s15 = smov [#allocation2]   ;;  %s2097_s0 = inlined_call_operand.vmem [shape: f32[64,192], index: 0, kind: input, shape index: {}]   ;;  %s2098_s1 = inlined_call_operand.vmem [shape: f32[64,128], index: 1, kind: input, shape index: {}]   ;;  %s2099_s2 = inlined_call_operand.hbm [shape: bf16[3,128,384], index: 2, kind: input, shape index: {}]   ;;  %s2100_s3 = inlined_call_operand.vmem [shape: f32[3,1,128], index: 3, kind: input, shape index: {}]   ;;  %s2101_s4 = inlined_call_operand.vmem [shape: f32[64,128], index: 4, kind: output, shape index: {}]  }
   0x1   :  { %s19_s16 = sshll.u32 %s1798_s15, 4  ;;  %s1774_s19 = scalar_lea.hbm %s2099_s2, 9216  ;;  %s20_s16 = int_to_ptr.vmem [resolvable:$true] %s19_s16 }
   0x2   :  { %p1775_p0 = scmp.ne.s32.totalorder %s2099_s2, %s1774_s19  ;;  %p1778_p1 = scmp.lt.u32.totalorder %s1774_s19, %s2099_s2 }
   0x4   :  { %p1780_p2 = pnand %p1778_p1, %p1775_p0 }
   0x6   :  { %1783 = shalt.err (!%p1780_p2)
}
   0x7   :  { %s1784_s24 = scalar_lea.vmem %s20_s16, 9216  ;;  %p1789_p4 = scmp.lt.s32.totalorder %s20_s16, %s20_s16 }
   0x8   :  { %p1785_p3 = scmp.ne.s32.totalorder %s20_s16, %s1784_s24  ;;  %p1790_p5 = scmp.lt.s32.totalorder %s1784_s24, %s1784_s24 }
   0xa   :  { %p1791_p6 = por %p1790_p5, %p1789_p4 }
   0xc   :  { %p1792_p7 = pnand %p1791_p6, %p1785_p3 }
   0xe   :  { %1795 = shalt.err (!%p1792_p7)
}
   0xf   :  { %s1799_s25 = smov 192   ;;  %s1800_s26 = smov 12  }
  0x10   :  { %25 = dma.hbm_to_vmem [thread:$0]  %s2099_s2, 9216, %s20_s16, [#allocation3], %s1799_s25, %s1799_s25, %s1800_s26  }
  0x11   :  { %1796 = dma.done.wait [#allocation3], 9216  }
  0x12   :  { %1797 = vsyncadd [#allocation3], 4294958080  ;;  %v1801_v0 = vmov 0   ;;  %v1678_v1 = vld [vmem:[#allocation2 + $0x4] ss:$12 sps:$4 sm:$0xff]   ;;  %v49_v11 = vld [vmem:[%s2098_s1 + $0x8] sm:$0xff] }
  0x13   :  { %252 = vmatprep.mubr.bf16.mxu0 %v1801_v0  ;;  %v1680_v2 = vld [vmem:[#allocation2] ss:$12 sps:$4 sm:$0xff]   ;;  %220 = vmatprep.subr.bf16.mxu0 %v1678_v1  ;;  %v1681_v3 = vld [vmem:[#allocation2 + $0x1c] ss:$12 sps:$4 sm:$0xff]   ;;  %v1683_v4 = vld [vmem:[#allocation2 + $0x18] ss:$12 sps:$4 sm:$0xff]  }
  0x14   :  { %221 = vmatpush1.bf16.msra.mxu0 %v1680_v2  ;;  %v1684_v5 = vld [vmem:[#allocation2 + $0x34] ss:$12 sps:$4 sm:$0xff]   ;;  %v1686_v6 = vld [vmem:[#allocation2 + $0x30] ss:$12 sps:$4 sm:$0xff]   ;;  %v1687_v7 = vld [vmem:[#allocation2 + $0x4c] ss:$12 sps:$4 sm:$0xff]  }
  0x15   :  { %222 = vmatprep.subr.bf16.mxu0 %v1681_v3  ;;  %v48_v8 = vld [vmem:[%s2098_s1] sm:$0xff]  ;;  %v1689_v9 = vld [vmem:[#allocation2 + $0x48] ss:$12 sps:$4 sm:$0xff]   ;;  %v1705_v20 = vld [vmem:[#allocation2 + $0x50] ss:$12 sps:$4 sm:$0xff]   ;;  %v1802_v37 = vmov 0.0|0.0  }
  0x16   :  { %v1690_v10 = vld [vmem:[#allocation2 + $0x64] ss:$12 sps:$4 sm:$0xff]   ;;  %v56_v12 = vpack.c.bf16 %v49_v11, %v48_v8  ;;  %v1702_v13 = vld [vmem:[#allocation2 + $0x8] ss:$12 sps:$4 sm:$0xff]   ;;  %v1703_v14 = vld [vmem:[#allocation2 + $0x20] ss:$12 sps:$4 sm:$0xff]  }
  0x17   :  { %1493 = vmatprep.subr.bf16.mxu1 %v1702_v13  ;;  %v1692_v15 = vld [vmem:[#allocation2 + $0x60] ss:$12 sps:$4 sm:$0xff]   ;;  %v1693_v16 = vld [vmem:[#allocation2 + $0x7c] ss:$12 sps:$4 sm:$0xff]   ;;  %v1704_v17 = vld [vmem:[#allocation2 + $0x38] ss:$12 sps:$4 sm:$0xff]  }
  0x18   :  { %223 = vmatpush1.bf16.msra.mxu0 %v1683_v4  ;;  %1509 = vmatprep.mubr.bf16.mxu1 %v56_v12  ;;  %v1695_v18 = vld [vmem:[#allocation2 + $0x78] ss:$12 sps:$4 sm:$0xff]   ;;  %v1696_v19 = vld [vmem:[#allocation2 + $0x94] ss:$12 sps:$4 sm:$0xff]   ;;  %v1698_v21 = vld [vmem:[#allocation2 + $0x90] ss:$12 sps:$4 sm:$0xff]  }
  0x19   :  { %224 = vmatprep.subr.bf16.mxu0 %v1684_v5  ;;  %1494 = vmatpush3.bf16.msra.mxu1 %v1702_v13  ;;  %v1699_v22 = vld [vmem:[#allocation2 + $0xac] ss:$12 sps:$4 sm:$0xff]   ;;  %v1706_v23 = vld [vmem:[#allocation2 + $0x68] ss:$12 sps:$4 sm:$0xff]   ;;  %v1709_v29 = vld [vmem:[#allocation2 + $0xb0] ss:$12 sps:$4 sm:$0xff]  }
  0x1a   :  { %1495 = vmatprep.subr.bf16.mxu1 %v1703_v14  ;;  %v1701_v24 = vld [vmem:[#allocation2 + $0xa8] ss:$12 sps:$4 sm:$0xff]   ;;  %v1707_v25 = vld [vmem:[#allocation2 + $0x80] ss:$12 sps:$4 sm:$0xff]   ;;  %v1708_v26 = vld [vmem:[#allocation2 + $0x98] ss:$12 sps:$4 sm:$0xff]  }
  0x1b   :  { %v50_v27 = vld [vmem:[%s2098_s1 + $0x10] sm:$0xff]  ;;  %v51_v28 = vld [vmem:[%s2098_s1 + $0x18] sm:$0xff]  ;;  %v52_v31 = vld [vmem:[%s2098_s1 + $0x20] sm:$0xff]  ;;  %vm365_vm0 = vcmask 523264  }
  0x1c   :  { %225 = vmatpush1.bf16.msra.mxu0 %v1686_v6  ;;  %v57_v30 = vpack.c.bf16 %v51_v28, %v50_v27  ;;  %v53_v32 = vld [vmem:[%s2098_s1 + $0x28] sm:$0xff]  ;;  %v54_v34 = vld [vmem:[%s2098_s1 + $0x30] sm:$0xff]  ;;  %v55_v35 = vld [vmem:[%s2098_s1 + $0x38] sm:$0xff] }
  0x1d   :  { %226 = vmatprep.subr.bf16.mxu0 %v1687_v7  ;;  %1496 = vmatpush3.bf16.msra.mxu1 %v1703_v14  ;;  %v58_v33 = vpack.c.bf16 %v53_v32, %v52_v31  ;;  %v59_v36 = vpack.c.bf16 %v55_v35, %v54_v34  ;;  %v1873_v38 = vld [vmem:[%s2097_s0 + $0x8] sm:$0xff]  ;;  %v1712_v40 = vld [vmem:[#allocation2 + $0xc4] ss:$12 sps:$4 sm:$0xff]   ;;  %v1718_v43 = vld [vmem:[#allocation2 + $0xf4] ss:$12 sps:$4 sm:$0xff]  }
  0x1e   :  { %1497 = vmatprep.subr.bf16.mxu1 %v1704_v17  ;;  %v1710_v39 = vld [vmem:[#allocation2 + $0xc0] ss:$12 sps:$4 sm:$0xff]   ;;  %v1715_v41 = vld [vmem:[#allocation2 + $0xdc] ss:$12 sps:$4 sm:$0xff]   ;;  %v1713_v42 = vld [vmem:[#allocation2 + $0xd8] ss:$12 sps:$4 sm:$0xff]  }
  0x1f   :  { %v1716_v44 = vld [vmem:[#allocation2 + $0xf0] ss:$12 sps:$4 sm:$0xff]   ;;  %v1721_v45 = vld [vmem:[#allocation2 + $0x10c] ss:$12 sps:$4 sm:$0xff]   ;;  %v1719_v46 = vld [vmem:[#allocation2 + $0x108] ss:$12 sps:$4 sm:$0xff]  }
  0x20   :  { %227 = vmatpush1.bf16.msra.mxu0 %v1689_v9  ;;  %v1724_v47 = vld [vmem:[#allocation2 + $0x124] ss:$12 sps:$4 sm:$0xff]   ;;  %v1722_v48 = vld [vmem:[#allocation2 + $0x120] ss:$12 sps:$4 sm:$0xff]   ;;  %v1727_v49 = vld [vmem:[#allocation2 + $0x13c] ss:$12 sps:$4 sm:$0xff]  }
  0x21   :  { %228 = vmatprep.subr.bf16.mxu0 %v1690_v10  ;;  %1498 = vmatpush3.bf16.msra.mxu1 %v1704_v17  ;;  %v1725_v50 = vld [vmem:[#allocation2 + $0x138] ss:$12 sps:$4 sm:$0xff]   ;;  %v1910_v27 = vld [vmem:[%s2097_s0 + $0x28] sm:$0xff]  ;;  %v1957_v34 = vld [vmem:[%s2097_s0 + $0x50] sm:$0xff] }
  0x22   :  { %1499 = vmatprep.subr.bf16.mxu1 %v1705_v20  ;;  %v1918_v28 = vld [vmem:[%s2097_s0 + $0x20] sm:$0xff]  ;;  %v1936_v31 = vld [vmem:[%s2097_s0 + $0x48] sm:$0xff] }
  0x23   :  { %v1944_v32 = vld [vmem:[%s2097_s0 + $0x40] sm:$0xff]  ;;  %v1962_v35 = vld [vmem:[%s2097_s0 + $0x68] sm:$0xff] }
  0x24   :  { %229 = vmatpush1.bf16.msra.mxu0 %v1692_v15 }
  0x25   :  { %230 = vmatprep.subr.bf16.mxu0 %v1693_v16  ;;  %1500 = vmatpush3.bf16.msra.mxu1 %v1705_v20 }
  0x26   :  { %1501 = vmatprep.subr.bf16.mxu1 %v1706_v23 }
  0x28   :  { %231 = vmatpush1.bf16.msra.mxu0 %v1695_v18 }
  0x29   :  { %232 = vmatprep.subr.bf16.mxu0 %v1696_v19  ;;  %1502 = vmatpush3.bf16.msra.mxu1 %v1706_v23 }
  0x2a   :  { %1503 = vmatprep.subr.bf16.mxu1 %v1707_v25 }
  0x2c   :  { %233 = vmatpush1.bf16.msra.mxu0 %v1698_v21 }
  0x2d   :  { %234 = vmatprep.subr.bf16.mxu0 %v1699_v22  ;;  %1504 = vmatpush3.bf16.msra.mxu1 %v1707_v25  ;;  %v1896_v25 = vld [vmem:[%s2097_s0 + $0x18] sm:$0xff] }
  0x2e   :  { %1505 = vmatprep.subr.bf16.mxu1 %v1708_v26 }
  0x30   :  { %235 = vmatpush1.bf16.msra.mxu0 %v1701_v24  ;;  %v1891_v24 = vld [vmem:[%s2097_s0] sm:$0xff] }
  0x31   :  { %1506 = vmatpush3.bf16.msra.mxu1 %v1708_v26  ;;  %1565 = vmatprep.subr.bf16.mxu0 %v1802_v37  ;;  %v1905_v26 = vld [vmem:[%s2097_s0 + $0x10] sm:$0xff] }
  0x32   :  { %1507 = vmatprep.subr.bf16.mxu1 %v1709_v29 }
  0x33   :  { %253 = vmatmul.mubr.bf16.vlgmr.msra.gmra.mrb[0].mxu0 %v56_v12 }
  0x34   :  { %262 = vmatprep.mubr.bf16.mxu0 %v1801_v0 }
  0x35   :  { %1508 = vmatpush3.bf16.msra.mxu1 %v1709_v29  ;;  %v1923_v29 = vld [vmem:[%s2097_s0 + $0x38] sm:$0xff] }
  0x36   :  { %668 = vmatprep.subr.bf16.mxu1 %v1712_v40  ;;  %v1983_v40 = vld [vmem:[%s2097_s0 + $0x70] sm:$0xff] }
  0x38   :  { %1510 = vmatmul.mubr.bf16.vlgmr.msra.gmra.mrb[0].mxu1 %v57_v30 }
  0x39   :  { %1513 = vmatprep.mubr.bf16.mxu1 %v58_v33  ;;  %669 = vmatpush1.bf16.msra.mxu1 %v1710_v39  ;;  %v1975_v39 = vld [vmem:[%s2097_s0 + $0x78] sm:$0xff] }
  0x3a   :  { %670 = vmatprep.subr.bf16.mxu1 %v1715_v41  ;;  %v1730_v41 = vld [vmem:[#allocation2 + $0x154] ss:$12 sps:$4 sm:$0xff]  }
  0x3b   :  { %263 = vmatmul.mubr.bf16.gmra.mrb[4].mxu0 %v57_v30  ;;  %v1931_v30 = vld [vmem:[%s2097_s0 + $0x30] sm:$0xff] }
  0x3c   :  { %272 = vmatprep.mubr.bf16.mxu0 %v1801_v0 }
  0x3d   :  { %671 = vmatpush1.bf16.msra.mxu1 %v1713_v42  ;;  %v1728_v42 = vld [vmem:[#allocation2 + $0x150] ss:$12 sps:$4 sm:$0xff]  }
  0x3e   :  { %672 = vmatprep.subr.bf16.mxu1 %v1718_v43  ;;  %v1733_v43 = vld [vmem:[#allocation2 + $0x16c] ss:$12 sps:$4 sm:$0xff]  }
  0x40   :  { %1514 = vmatmul.mubr.bf16.gmra.mrb[4].mxu1 %v59_v36 }
  0x41   :  { %700 = vmatprep.mubr.bf16.mxu1 %v1801_v0  ;;  %673 = vmatpush1.bf16.msra.mxu1 %v1716_v44  ;;  %v1731_v44 = vld [vmem:[#allocation2 + $0x168] ss:$12 sps:$4 sm:$0xff]  }
  0x42   :  { %674 = vmatprep.subr.bf16.mxu1 %v1721_v45  ;;  %v1734_v45 = vld [vmem:[#allocation2 + $0xc8] ss:$12 sps:$4 sm:$0xff]  }
  0x43   :  { %273 = vmatmul.mubr.bf16.gmra.mrb[8].mxu0 %v58_v33  ;;  %v1949_v33 = vld [vmem:[%s2097_s0 + $0x58] sm:$0xff] }
  0x44   :  { %282 = vmatprep.mubr.bf16.mxu0 %v1801_v0 }
  0x45   :  { %675 = vmatpush1.bf16.msra.mxu1 %v1719_v46  ;;  %v1380_v46 = vld [vmem:[%s2100_s3] ss:$0 sm:$0xff] }
  0x46   :  { %676 = vmatprep.subr.bf16.mxu1 %v1724_v47 }
  0x49   :  { %677 = vmatpush1.bf16.msra.mxu1 %v1722_v48 }
  0x4a   :  { %678 = vmatprep.subr.bf16.mxu1 %v1727_v49 }
  0x4b   :  { %283 = vmatmul.mubr.bf16.gmra.mrb[12].mxu0 %v59_v36  ;;  %v1970_v36 = vld [vmem:[%s2097_s0 + $0x60] sm:$0xff] }
  0x4c   :  { %1381 = vmatprep.mubr.msk.f32.mxu0 %vm365_vm0, %v1873_v38 }
  0x4d   :  { %679 = vmatpush1.bf16.msra.mxu1 %v1725_v50 }
  0x4e   :  { %680 = vmatprep.subr.bf16.mxu1 %v1730_v41 }
  0x51   :  { %681 = vmatpush1.bf16.msra.mxu1 %v1728_v42 }
  0x52   :  { %682 = vmatprep.subr.bf16.mxu1 %v1733_v43  ;;  %v1741_v43 = vld [vmem:[#allocation2 + $0x170] ss:$12 sps:$4 sm:$0xff]  }
  0x55   :  { %683 = vmatpush1.bf16.msra.mxu1 %v1731_v44  ;;  %v1742_v44 = vld [vmem:[#allocation2 + $0x180] ss:$12 sps:$4 sm:$0xff]  }
  0x56   :  { %1517 = vmatprep.subr.bf16.mxu1 %v1734_v45 }
 0x106   :  { %v254_v51 = vpop.f32.mrb[0].mxu0 }
 0x107   :  { %v256_v52 = vpop.f32.mrb[1].mxu0 }
 0x108   :  { %v258_v53 = vpop.f32.mrb[2].mxu0 }
 0x109   :  { %v1566_v54 = vpack.c.bf16 %v258_v53, %v254_v51  ;;  %v260_v55 = vpop.f32.mrb[3].mxu0 }
 0x10a   :  { %v1578_v56 = vpack.c.bf16 %v260_v55, %v256_v52 }
 0x10b   :  { %1567 = vmatpush1.bf16.msra.mxu0 %v1566_v54  ;;  %v1511_v63 = vpop.f32.mrb[0].mxu1 }
 0x10c   :  { %1568 = vmatprep.subr.bf16.mxu0 %v1802_v37  ;;  %v327_v1 = vpop.f32.mrb[1].mxu1 }
 0x10d   :  { %v1512_v2 = vpop.f32.mrb[2].mxu1 }
 0x10e   :  { %v264_v57 = vpop.f32.mrb[4].mxu0  ;;  %v1593_v3 = vpack.c.bf16 %v1512_v2, %v1511_v63  ;;  %v330_v4 = vpop.f32.mrb[3].mxu1  ;;  %v1736_v63 = vld [vmem:[#allocation2 + $0xf8] ss:$12 sps:$4 sm:$0xff]  }
 0x10f   :  { %v266_v58 = vpop.f32.mrb[5].mxu0  ;;  %v1590_v6 = vpack.c.bf16 %v330_v4, %v327_v1 }
 0x110   :  { %v268_v59 = vpop.f32.mrb[6].mxu0 }
 0x111   :  { %v1569_v60 = vpack.c.bf16 %v268_v59, %v264_v57  ;;  %v270_v61 = vpop.f32.mrb[7].mxu0 }
 0x112   :  { %v1581_v62 = vpack.c.bf16 %v270_v61, %v266_v58  ;;  %v1735_v58 = vld [vmem:[#allocation2 + $0xe0] ss:$12 sps:$4 sm:$0xff]  }
 0x113   :  { %1570 = vmatpush1.bf16.msra.mxu0 %v1569_v60  ;;  %v1515_v12 = vpop.f32.mrb[4].mxu1 }
 0x114   :  { %1571 = vmatprep.subr.bf16.mxu0 %v1802_v37  ;;  %v343_v13 = vpop.f32.mrb[5].mxu1 }
 0x115   :  { %v1516_v14 = vpop.f32.mrb[6].mxu1 }
 0x116   :  { %v274_v5 = vpop.f32.mrb[8].mxu0  ;;  %v1599_v15 = vpack.c.bf16 %v1516_v14, %v1515_v12  ;;  %v346_v16 = vpop.f32.mrb[7].mxu1 }
 0x117   :  { %v276_v7 = vpop.f32.mrb[9].mxu0  ;;  %v1596_v18 = vpack.c.bf16 %v346_v16, %v343_v13 }
 0x118   :  { %v278_v8 = vpop.f32.mrb[10].mxu0 }
 0x119   :  { %v1572_v9 = vpack.c.bf16 %v278_v8, %v274_v5  ;;  %v280_v10 = vpop.f32.mrb[11].mxu0 }
 0x11a   :  { %v1584_v11 = vpack.c.bf16 %v280_v10, %v276_v7 }
 0x11b   :  { %1573 = vmatpush1.bf16.msra.mxu0 %v1572_v9 }
 0x11c   :  { %1574 = vmatprep.subr.bf16.mxu0 %v1802_v37 }
 0x11e   :  { %v284_v17 = vpop.f32.mrb[12].mxu0 }
 0x11f   :  { %v286_v19 = vpop.f32.mrb[13].mxu0 }
 0x120   :  { %v288_v20 = vpop.f32.mrb[14].mxu0 }
 0x121   :  { %v1575_v21 = vpack.c.bf16 %v288_v20, %v284_v17  ;;  %v290_v22 = vpop.f32.mrb[15].mxu0  ;;  %v1739_v17 = vld [vmem:[#allocation2 + $0x140] ss:$12 sps:$4 sm:$0xff]  }
 0x122   :  { %v1587_v23 = vpack.c.bf16 %v290_v22, %v286_v19  ;;  %v1740_v22 = vld [vmem:[#allocation2 + $0x158] ss:$12 sps:$4 sm:$0xff]  }
 0x123   :  { %1576 = vmatpush1.bf16.msra.mxu0 %v1575_v21 }
 0x124   :  { %1577 = vmatprep.subr.bf16.mxu0 %v1802_v37 }
 0x127   :  { %1579 = vmatpush1.bf16.msra.mxu0 %v1578_v56 }
 0x128   :  { %1580 = vmatprep.subr.bf16.mxu0 %v1802_v37 }
 0x12b   :  { %1582 = vmatpush1.bf16.msra.mxu0 %v1581_v62 }
 0x12c   :  { %1583 = vmatprep.subr.bf16.mxu0 %v1802_v37 }
 0x12f   :  { %1585 = vmatpush1.bf16.msra.mxu0 %v1584_v11  ;;  %v1738_v11 = vld [vmem:[#allocation2 + $0x128] ss:$12 sps:$4 sm:$0xff]  }
 0x130   :  { %1586 = vmatprep.subr.bf16.mxu0 %v1802_v37 }
 0x133   :  { %1588 = vmatpush1.bf16.msra.mxu0 %v1587_v23 }
 0x134   :  { %1589 = vmatprep.subr.bf16.mxu0 %v1802_v37 }
 0x137   :  { %1591 = vmatpush1.bf16.msra.mxu0 %v1590_v6  ;;  %v1737_v6 = vld [vmem:[#allocation2 + $0x110] ss:$12 sps:$4 sm:$0xff]  }
 0x138   :  { %1592 = vmatprep.subr.bf16.mxu0 %v1802_v37 }
 0x13b   :  { %1594 = vmatpush1.bf16.msra.mxu0 %v1593_v3 }
 0x13c   :  { %1595 = vmatprep.subr.bf16.mxu0 %v1802_v37 }
 0x13f   :  { %1597 = vmatpush1.bf16.msra.mxu0 %v1596_v18 }
 0x140   :  { %1598 = vmatprep.subr.bf16.mxu0 %v1802_v37 }
 0x143   :  { %1600 = vmatpush1.bf16.msra.mxu0 %v1599_v15 }
 0x144   :  { %1601 = vmatprep.subr.bf16.mxu0 %v1802_v37 }
 0x146   :  { %455 = vmatmul.mubr.f32.vlgmr.msra.gmra.mrb[16].mxu0 %v1891_v24 }
 0x147   :  { %1382 = vmatprep.mubr.msk.f32.mxu0 %vm365_vm0, %v1896_v25 }
 0x14a   :  { %460 = vmatmul.mubr.f32.gmra.mrb[18].mxu0 %v1905_v26 }
 0x14b   :  { %1383 = vmatprep.mubr.msk.f32.mxu0 %vm365_vm0, %v1910_v27 }
 0x14e   :  { %465 = vmatmul.mubr.f32.gmra.mrb[20].mxu0 %v1918_v28 }
 0x14f   :  { %1384 = vmatprep.mubr.msk.f32.mxu0 %vm365_vm0, %v1923_v29 }
 0x152   :  { %470 = vmatmul.mubr.f32.gmra.mrb[22].mxu0 %v1931_v30 }
 0x153   :  { %1385 = vmatprep.mubr.msk.f32.mxu0 %vm365_vm0, %v1936_v31 }
 0x156   :  { %475 = vmatmul.mubr.f32.gmra.mrb[24].mxu0 %v1944_v32 }
 0x157   :  { %1386 = vmatprep.mubr.msk.f32.mxu0 %vm365_vm0, %v1949_v33 }
 0x15a   :  { %480 = vmatmul.mubr.f32.gmra.mrb[26].mxu0 %v1957_v34 }
 0x15b   :  { %1387 = vmatprep.mubr.msk.f32.mxu0 %vm365_vm0, %v1962_v35 }
 0x15e   :  { %485 = vmatmul.mubr.f32.gmra.mrb[28].mxu0 %v1970_v36 }
 0x15f   :  { %1388 = vmatprep.mubr.msk.f32.mxu0 %vm365_vm0, %v1975_v39 }
 0x162   :  { %490 = vmatmul.mubr.f32.gmra.mrb[30].mxu0 %v1983_v40 }
 0x163   :  { %1415 = vmatprep.mubr.msk.f32.mxu0 %vm365_vm0, %v1873_v38 }
 0x219   :  { %v456_v47 = vpop.f32.mrb[16].mxu0 }
 0x21a   :  { %v458_v48 = vpop.f32.mrb[17].mxu0  ;;  %v457_v49 = vadd.f32 %v1380_v46, %v456_v47  ;;  %v1745_v47 = vld [vmem:[#allocation2 + $0x198] ss:$12 sps:$4 sm:$0xff]  }
 0x21b   :  { %v1750_v48 = vld [vmem:[#allocation2 + $0x1b4] ss:$12 sps:$4 sm:$0xff]  }
 0x21c   :  { %v495_v53 = vmax.f32 %v457_v49, 0.0  ;;  %v1748_v49 = vld [vmem:[#allocation2 + $0x1b0] ss:$12 sps:$4 sm:$0xff]  }
 0x21d   :  { %v461_v50 = vpop.f32.mrb[18].mxu0 }
 0x21e   :  { %v462_v51 = vadd.f32 %v1380_v46, %v461_v50  ;;  %v463_v52 = vpop.f32.mrb[19].mxu0  ;;  %v1754_v50 = vld [vmem:[#allocation2 + $0x1cc] ss:$12 sps:$4 sm:$0xff]  }
 0x21f   :  { %v1758_v52 = vld [vmem:[#allocation2 + $0x1e4] ss:$12 sps:$4 sm:$0xff]  }
 0x220   :  { %v496_v54 = vmax.f32 %v462_v51, 0.0  ;;  %v1752_v51 = vld [vmem:[#allocation2 + $0x1c8] ss:$12 sps:$4 sm:$0xff]  }
 0x221   :  { %v466_v55 = vpop.f32.mrb[20].mxu0 }
 0x222   :  { %v503_v56 = vpack.c.bf16 %v496_v54, %v495_v53  ;;  %v468_v57 = vpop.f32.mrb[21].mxu0  ;;  %v467_v59 = vadd.f32 %v1380_v46, %v466_v55  ;;  %v1756_v53 = vld [vmem:[#allocation2 + $0x1e0] ss:$12 sps:$4 sm:$0xff]   ;;  %v1762_v54 = vld [vmem:[#allocation2 + $0x1fc] ss:$12 sps:$4 sm:$0xff]  }
 0x223   :  { %v1760_v55 = vld [vmem:[#allocation2 + $0x1f8] ss:$12 sps:$4 sm:$0xff]  }
 0x224   :  { %701 = vmatmul.mubr.bf16.vlgmr.msra.gmra.mrb[8].mxu1 %v503_v56  ;;  %v497_v1 = vmax.f32 %v467_v59, 0.0 }
 0x225   :  { %v471_v60 = vpop.f32.mrb[22].mxu0  ;;  %1518 = vmatpush3.bf16.msra.mxu1 %v1734_v45  ;;  %710 = vmatprep.mubr.bf16.mxu1 %v1801_v0  ;;  %v1744_v45 = vld [vmem:[#allocation2 + $0x184] ss:$12 sps:$4 sm:$0xff]  }
 0x226   :  { %v472_v61 = vadd.f32 %v1380_v46, %v471_v60  ;;  %v473_v62 = vpop.f32.mrb[23].mxu0  ;;  %1519 = vmatprep.subr.bf16.mxu1 %v1735_v58 }
 0x228   :  { %v498_v2 = vmax.f32 %v472_v61, 0.0 }
 0x229   :  { %v476_v3 = vpop.f32.mrb[24].mxu0  ;;  %1520 = vmatpush3.bf16.msra.mxu1 %v1735_v58 }
 0x22a   :  { %v504_v4 = vpack.c.bf16 %v498_v2, %v497_v1  ;;  %v478_v5 = vpop.f32.mrb[25].mxu0  ;;  %1521 = vmatprep.subr.bf16.mxu1 %v1736_v63  ;;  %v477_v7 = vadd.f32 %v1380_v46, %v476_v3 }
 0x22c   :  { %711 = vmatmul.mubr.bf16.gmra.mrb[12].mxu1 %v504_v4  ;;  %v499_v12 = vmax.f32 %v477_v7, 0.0 }
 0x22d   :  { %v481_v8 = vpop.f32.mrb[26].mxu0  ;;  %1522 = vmatpush3.bf16.msra.mxu1 %v1736_v63  ;;  %720 = vmatprep.mubr.bf16.mxu1 %v1801_v0 }
 0x22e   :  { %v482_v9 = vadd.f32 %v1380_v46, %v481_v8  ;;  %v483_v10 = vpop.f32.mrb[27].mxu0  ;;  %1523 = vmatprep.subr.bf16.mxu1 %v1737_v6 }
 0x230   :  { %v500_v13 = vmax.f32 %v482_v9, 0.0 }
 0x231   :  { %v486_v14 = vpop.f32.mrb[28].mxu0  ;;  %1524 = vmatpush3.bf16.msra.mxu1 %v1737_v6 }
 0x232   :  { %v505_v15 = vpack.c.bf16 %v500_v13, %v499_v12  ;;  %v488_v16 = vpop.f32.mrb[29].mxu0  ;;  %1525 = vmatprep.subr.bf16.mxu1 %v1738_v11  ;;  %v487_v18 = vadd.f32 %v1380_v46, %v486_v14 }
 0x234   :  { %721 = vmatmul.mubr.bf16.gmra.mrb[16].mxu1 %v505_v15  ;;  %v501_v23 = vmax.f32 %v487_v18, 0.0 }
 0x235   :  { %v491_v19 = vpop.f32.mrb[30].mxu0  ;;  %1526 = vmatpush3.bf16.msra.mxu1 %v1738_v11  ;;  %730 = vmatprep.mubr.bf16.mxu1 %v1801_v0 }
 0x236   :  { %v492_v20 = vadd.f32 %v1380_v46, %v491_v19  ;;  %v493_v21 = vpop.f32.mrb[31].mxu0  ;;  %1527 = vmatprep.subr.bf16.mxu1 %v1739_v17  ;;  %v1747_v46 = vld [vmem:[#allocation2 + $0x19c] ss:$12 sps:$4 sm:$0xff]  }
 0x238   :  { %v502_v41 = vmax.f32 %v492_v20, 0.0 }
 0x239   :  { %1528 = vmatpush3.bf16.msra.mxu1 %v1739_v17 }
 0x23a   :  { %v506_v42 = vpack.c.bf16 %v502_v41, %v501_v23  ;;  %1529 = vmatprep.subr.bf16.mxu1 %v1740_v22 }
 0x23c   :  { %731 = vmatmul.mubr.bf16.gmra.mrb[20].mxu1 %v506_v42 }
 0x23d   :  { %1530 = vmatpush3.bf16.msra.mxu1 %v1740_v22  ;;  %1533 = vmatprep.mubr.bf16.mxu1 %v503_v56 }
 0x23e   :  { %1531 = vmatprep.subr.bf16.mxu1 %v1741_v43 }
 0x241   :  { %1532 = vmatpush3.bf16.msra.mxu1 %v1741_v43 }
 0x242   :  { %1092 = vmatprep.subr.bf16.mxu1 %v1744_v45 }
 0x244   :  { %1534 = vmatmul.mubr.bf16.vlgmr.msra.gmra.mrb[24].mxu1 %v504_v4 }
 0x245   :  { %1537 = vmatprep.mubr.bf16.mxu1 %v505_v15  ;;  %1093 = vmatpush1.bf16.msra.mxu1 %v1742_v44 }
 0x246   :  { %1094 = vmatprep.subr.bf16.mxu1 %v1747_v46  ;;  %v1751_v46 = vld [vmem:[#allocation2 + $0x188] ss:$12 sps:$4 sm:$0xff]  }
 0x249   :  { %1095 = vmatpush1.bf16.msra.mxu1 %v1745_v47  ;;  %v1755_v47 = vld [vmem:[#allocation2 + $0x1a0] ss:$12 sps:$4 sm:$0xff]  }
 0x24a   :  { %1096 = vmatprep.subr.bf16.mxu1 %v1750_v48  ;;  %v1759_v48 = vld [vmem:[#allocation2 + $0x1b8] ss:$12 sps:$4 sm:$0xff]  }
 0x24c   :  { %1538 = vmatmul.mubr.bf16.gmra.mrb[28].mxu1 %v506_v42 }
 0x24d   :  { %1124 = vmatprep.mubr.bf16.mxu1 %v1801_v0  ;;  %1097 = vmatpush1.bf16.msra.mxu1 %v1748_v49  ;;  %v1763_v49 = vld [vmem:[#allocation2 + $0x1d0] ss:$12 sps:$4 sm:$0xff]  }
 0x24e   :  { %1098 = vmatprep.subr.bf16.mxu1 %v1754_v50  ;;  %v1766_v50 = vld [vmem:[#allocation2 + $0x214] ss:$12 sps:$4 sm:$0xff]  }
 0x251   :  { %1099 = vmatpush1.bf16.msra.mxu1 %v1752_v51  ;;  %v1767_v51 = vld [vmem:[#allocation2 + $0x1e8] ss:$12 sps:$4 sm:$0xff]  }
 0x252   :  { %1100 = vmatprep.subr.bf16.mxu1 %v1758_v52  ;;  %v1764_v52 = vld [vmem:[#allocation2 + $0x210] ss:$12 sps:$4 sm:$0xff]  }
 0x255   :  { %1101 = vmatpush1.bf16.msra.mxu1 %v1756_v53  ;;  %v1770_v53 = vld [vmem:[#allocation2 + $0x22c] ss:$12 sps:$4 sm:$0xff]  }
 0x256   :  { %1102 = vmatprep.subr.bf16.mxu1 %v1762_v54  ;;  %v1771_v54 = vld [vmem:[#allocation2 + $0x200] ss:$12 sps:$4 sm:$0xff]  }
 0x259   :  { %1103 = vmatpush1.bf16.msra.mxu1 %v1760_v55  ;;  %v1768_v55 = vld [vmem:[#allocation2 + $0x228] ss:$12 sps:$4 sm:$0xff]  }
 0x25a   :  { %1104 = vmatprep.subr.bf16.mxu1 %v1766_v50 }
 0x25d   :  { %1105 = vmatpush1.bf16.msra.mxu1 %v1764_v52 }
 0x25e   :  { %1106 = vmatprep.subr.bf16.mxu1 %v1770_v53 }
 0x261   :  { %1107 = vmatpush1.bf16.msra.mxu1 %v1768_v55 }
 0x262   :  { %1637 = vmatprep.subr.bf16.mxu1 %v1802_v37 }
 0x2f7   :  { %v702_v56 = vpop.f32.mrb[8].mxu1 }
 0x2f8   :  { %v704_v57 = vpop.f32.mrb[9].mxu1 }
 0x2f9   :  { %v706_v58 = vpop.f32.mrb[10].mxu1 }
 0x2fa   :  { %v1602_v59 = vpack.c.bf16 %v706_v58, %v702_v56  ;;  %v708_v60 = vpop.f32.mrb[11].mxu1  ;;  %v1772_v56 = vld [vmem:[#allocation2 + $0x218] ss:$12 sps:$4 sm:$0xff]   ;;  %v1414_v58 = vld [vmem:[%s2100_s3 + $0x1] ss:$0 sm:$0xff] }
 0x2fb   :  { %v1614_v61 = vpack.c.bf16 %v708_v60, %v704_v57  ;;  %v1773_v57 = vld [vmem:[#allocation2 + $0x230] ss:$12 sps:$4 sm:$0xff]  }
 0x2fc   :  { %1603 = vmatpush1.bf16.msra.mxu0 %v1602_v59 }
 0x2fd   :  { %1604 = vmatprep.subr.bf16.mxu0 %v1802_v37 }
 0x2ff   :  { %v712_v62 = vpop.f32.mrb[12].mxu1 }
 0x300   :  { %v714_v63 = vpop.f32.mrb[13].mxu1 }
 0x301   :  { %v716_v1 = vpop.f32.mrb[14].mxu1 }
 0x302   :  { %v1605_v2 = vpack.c.bf16 %v716_v1, %v712_v62  ;;  %v718_v3 = vpop.f32.mrb[15].mxu1 }
 0x303   :  { %v1617_v4 = vpack.c.bf16 %v718_v3, %v714_v63 }
 0x304   :  { %1606 = vmatpush1.bf16.msra.mxu0 %v1605_v2 }
 0x305   :  { %1607 = vmatprep.subr.bf16.mxu0 %v1802_v37 }
 0x307   :  { %v722_v5 = vpop.f32.mrb[16].mxu1 }
 0x308   :  { %v724_v6 = vpop.f32.mrb[17].mxu1 }
 0x309   :  { %v726_v7 = vpop.f32.mrb[18].mxu1 }
 0x30a   :  { %v1608_v8 = vpack.c.bf16 %v726_v7, %v722_v5  ;;  %v728_v9 = vpop.f32.mrb[19].mxu1 }
 0x30b   :  { %v1620_v10 = vpack.c.bf16 %v728_v9, %v724_v6 }
 0x30c   :  { %1609 = vmatpush1.bf16.msra.mxu0 %v1608_v8 }
 0x30d   :  { %1610 = vmatprep.subr.bf16.mxu0 %v1802_v37 }
 0x30f   :  { %v732_v11 = vpop.f32.mrb[20].mxu1 }
 0x310   :  { %v734_v12 = vpop.f32.mrb[21].mxu1 }
 0x311   :  { %v736_v13 = vpop.f32.mrb[22].mxu1 }
 0x312   :  { %v1611_v14 = vpack.c.bf16 %v736_v13, %v732_v11  ;;  %v738_v15 = vpop.f32.mrb[23].mxu1 }
 0x313   :  { %v1623_v16 = vpack.c.bf16 %v738_v15, %v734_v12 }
 0x314   :  { %1612 = vmatpush1.bf16.msra.mxu0 %v1611_v14 }
 0x315   :  { %1613 = vmatprep.subr.bf16.mxu0 %v1802_v37 }
 0x317   :  { %v1535_v17 = vpop.f32.mrb[24].mxu1 }
 0x318   :  { %v775_v18 = vpop.f32.mrb[25].mxu1  ;;  %1615 = vmatpush1.bf16.msra.mxu0 %v1614_v61 }
 0x319   :  { %v1536_v19 = vpop.f32.mrb[26].mxu1  ;;  %1616 = vmatprep.subr.bf16.mxu0 %v1802_v37 }
 0x31a   :  { %v1629_v20 = vpack.c.bf16 %v1536_v19, %v1535_v17  ;;  %v778_v21 = vpop.f32.mrb[27].mxu1 }
 0x31b   :  { %v1626_v22 = vpack.c.bf16 %v778_v21, %v775_v18 }
 0x31c   :  { %1618 = vmatpush1.bf16.msra.mxu0 %v1617_v4 }
 0x31d   :  { %1619 = vmatprep.subr.bf16.mxu0 %v1802_v37 }
 0x31f   :  { %v1539_v23 = vpop.f32.mrb[28].mxu1 }
 0x320   :  { %v791_v41 = vpop.f32.mrb[29].mxu1  ;;  %1621 = vmatpush1.bf16.msra.mxu0 %v1620_v10 }
 0x321   :  { %v1540_v42 = vpop.f32.mrb[30].mxu1  ;;  %1622 = vmatprep.subr.bf16.mxu0 %v1802_v37 }
 0x322   :  { %v1635_v43 = vpack.c.bf16 %v1540_v42, %v1539_v23  ;;  %v794_v44 = vpop.f32.mrb[31].mxu1 }
 0x323   :  { %v1632_v45 = vpack.c.bf16 %v794_v44, %v791_v41 }
 0x324   :  { %1624 = vmatpush1.bf16.msra.mxu0 %v1623_v16 }
 0x325   :  { %1625 = vmatprep.subr.bf16.mxu0 %v1802_v37 }
 0x328   :  { %1627 = vmatpush1.bf16.msra.mxu0 %v1626_v22 }
 0x329   :  { %1628 = vmatprep.subr.bf16.mxu0 %v1802_v37 }
 0x32c   :  { %1630 = vmatpush1.bf16.msra.mxu0 %v1629_v20 }
 0x32d   :  { %1631 = vmatprep.subr.bf16.mxu0 %v1802_v37 }
 0x330   :  { %1633 = vmatpush1.bf16.msra.mxu0 %v1632_v45 }
 0x331   :  { %1634 = vmatprep.subr.bf16.mxu0 %v1802_v37 }
 0x334   :  { %1636 = vmatpush1.bf16.msra.mxu0 %v1635_v43 }
 0x335   :  { %1541 = vmatprep.subr.bf16.mxu0 %v1751_v46 }
 0x337   :  { %879 = vmatmul.mubr.f32.vlgmr.msra.gmra.mrb[32].mxu0 %v1891_v24 }
 0x338   :  { %1416 = vmatprep.mubr.msk.f32.mxu0 %vm365_vm0, %v1896_v25  ;;  %1542 = vmatpush3.bf16.msra.mxu0 %v1751_v46 }
 0x339   :  { %1543 = vmatprep.subr.bf16.mxu0 %v1755_v47 }
 0x33b   :  { %884 = vmatmul.mubr.f32.gmra.mrb[34].mxu0 %v1905_v26 }
 0x33c   :  { %1417 = vmatprep.mubr.msk.f32.mxu0 %vm365_vm0, %v1910_v27  ;;  %1544 = vmatpush3.bf16.msra.mxu0 %v1755_v47 }
 0x33d   :  { %1545 = vmatprep.subr.bf16.mxu0 %v1759_v48 }
 0x33f   :  { %889 = vmatmul.mubr.f32.gmra.mrb[36].mxu0 %v1918_v28 }
 0x340   :  { %1418 = vmatprep.mubr.msk.f32.mxu0 %vm365_vm0, %v1923_v29  ;;  %1546 = vmatpush3.bf16.msra.mxu0 %v1759_v48 }
 0x341   :  { %1547 = vmatprep.subr.bf16.mxu0 %v1763_v49 }
 0x343   :  { %894 = vmatmul.mubr.f32.gmra.mrb[38].mxu0 %v1931_v30 }
 0x344   :  { %1419 = vmatprep.mubr.msk.f32.mxu0 %vm365_vm0, %v1936_v31  ;;  %1548 = vmatpush3.bf16.msra.mxu0 %v1763_v49 }
 0x345   :  { %1549 = vmatprep.subr.bf16.mxu0 %v1767_v51 }
 0x347   :  { %899 = vmatmul.mubr.f32.gmra.mrb[40].mxu0 %v1944_v32 }
 0x348   :  { %1420 = vmatprep.mubr.msk.f32.mxu0 %vm365_vm0, %v1949_v33  ;;  %1550 = vmatpush3.bf16.msra.mxu0 %v1767_v51 }
 0x349   :  { %1551 = vmatprep.subr.bf16.mxu0 %v1771_v54 }
 0x34b   :  { %904 = vmatmul.mubr.f32.gmra.mrb[42].mxu0 %v1957_v34 }
 0x34c   :  { %1421 = vmatprep.mubr.msk.f32.mxu0 %vm365_vm0, %v1962_v35  ;;  %1552 = vmatpush3.bf16.msra.mxu0 %v1771_v54 }
 0x34d   :  { %1553 = vmatprep.subr.bf16.mxu0 %v1772_v56 }
 0x34f   :  { %909 = vmatmul.mubr.f32.gmra.mrb[44].mxu0 %v1970_v36 }
 0x350   :  { %1422 = vmatprep.mubr.msk.f32.mxu0 %vm365_vm0, %v1975_v39  ;;  %1554 = vmatpush3.bf16.msra.mxu0 %v1772_v56 }
 0x351   :  { %1555 = vmatprep.subr.bf16.mxu0 %v1773_v57 }
 0x353   :  { %914 = vmatmul.mubr.f32.gmra.mrb[46].mxu0 %v1983_v40 }
 0x354   :  { %1556 = vmatpush3.bf16.msra.mxu0 %v1773_v57 }
 0x40a   :  { %v880_v59 = vpop.f32.mrb[32].mxu0 }
 0x40b   :  { %v882_v60 = vpop.f32.mrb[33].mxu0  ;;  %v881_v61 = vadd.f32 %v1414_v58, %v880_v59 }
 0x40d   :  { %v919_v2 = vmax.f32 %v881_v61, 0.0 }
 0x40e   :  { %v885_v62 = vpop.f32.mrb[34].mxu0 }
 0x40f   :  { %v886_v63 = vadd.f32 %v1414_v58, %v885_v62  ;;  %v887_v1 = vpop.f32.mrb[35].mxu0 }
 0x411   :  { %v920_v3 = vmax.f32 %v886_v63, 0.0 }
 0x412   :  { %v890_v4 = vpop.f32.mrb[36].mxu0 }
 0x413   :  { %v927_v5 = vpack.c.bf16 %v920_v3, %v919_v2  ;;  %v892_v6 = vpop.f32.mrb[37].mxu0  ;;  %v891_v7 = vadd.f32 %v1414_v58, %v890_v4 }
 0x415   :  { %1125 = vmatmul.mubr.bf16.vlgmr.msra.gmra.mrb[32].mxu1 %v927_v5  ;;  %1557 = vmatprep.mubr.bf16.mxu0 %v927_v5  ;;  %v921_v11 = vmax.f32 %v891_v7, 0.0 }
 0x416   :  { %v895_v8 = vpop.f32.mrb[38].mxu0  ;;  %1134 = vmatprep.mubr.bf16.mxu1 %v1801_v0 }
 0x417   :  { %v896_v9 = vadd.f32 %v1414_v58, %v895_v8  ;;  %v897_v10 = vpop.f32.mrb[39].mxu0 }
 0x419   :  { %v922_v12 = vmax.f32 %v896_v9, 0.0 }
 0x41a   :  { %v900_v13 = vpop.f32.mrb[40].mxu0 }
 0x41b   :  { %v928_v14 = vpack.c.bf16 %v922_v12, %v921_v11  ;;  %v902_v15 = vpop.f32.mrb[41].mxu0  ;;  %v901_v16 = vadd.f32 %v1414_v58, %v900_v13 }
 0x41d   :  { %1135 = vmatmul.mubr.bf16.gmra.mrb[36].mxu1 %v928_v14  ;;  %1558 = vmatmul.mubr.bf16.vlgmr.msra.gmra.mrb[48].mxu0 %v928_v14  ;;  %v923_v20 = vmax.f32 %v901_v16, 0.0 }
 0x41e   :  { %v905_v17 = vpop.f32.mrb[42].mxu0  ;;  %1144 = vmatprep.mubr.bf16.mxu1 %v1801_v0 }
 0x41f   :  { %v906_v18 = vadd.f32 %v1414_v58, %v905_v17  ;;  %v907_v19 = vpop.f32.mrb[43].mxu0 }
 0x421   :  { %v924_v21 = vmax.f32 %v906_v18, 0.0 }
 0x422   :  { %v910_v22 = vpop.f32.mrb[44].mxu0 }
 0x423   :  { %v929_v23 = vpack.c.bf16 %v924_v21, %v923_v20  ;;  %v912_v41 = vpop.f32.mrb[45].mxu0  ;;  %v911_v42 = vadd.f32 %v1414_v58, %v910_v22 }
 0x425   :  { %1145 = vmatmul.mubr.bf16.gmra.mrb[40].mxu1 %v929_v23  ;;  %1561 = vmatprep.mubr.bf16.mxu0 %v929_v23  ;;  %v925_v46 = vmax.f32 %v911_v42, 0.0 }
 0x426   :  { %v915_v43 = vpop.f32.mrb[46].mxu0  ;;  %1154 = vmatprep.mubr.bf16.mxu1 %v1801_v0 }
 0x427   :  { %v916_v44 = vadd.f32 %v1414_v58, %v915_v43  ;;  %v917_v45 = vpop.f32.mrb[47].mxu0 }
 0x429   :  { %v926_v47 = vmax.f32 %v916_v44, 0.0 }
 0x42b   :  { %v930_v48 = vpack.c.bf16 %v926_v47, %v925_v46 }
 0x42d   :  { %1155 = vmatmul.mubr.bf16.gmra.mrb[44].mxu1 %v930_v48  ;;  %1562 = vmatmul.mubr.bf16.gmra.mrb[52].mxu0 %v930_v48 }
 0x42e   :  { %1449 = vmatprep.mubr.msk.f32.mxu1 %vm365_vm0, %v1873_v38 }
 0x4e8   :  { %v1126_v49 = vpop.f32.mrb[32].mxu1 }
 0x4e9   :  { %v1128_v50 = vpop.f32.mrb[33].mxu1 }
 0x4ea   :  { %v1130_v51 = vpop.f32.mrb[34].mxu1 }
 0x4eb   :  { %v1638_v52 = vpack.c.bf16 %v1130_v51, %v1126_v49  ;;  %v1132_v53 = vpop.f32.mrb[35].mxu1 }
 0x4ec   :  { %v1650_v54 = vpack.c.bf16 %v1132_v53, %v1128_v50 }
 0x4ed   :  { %1639 = vmatpush1.bf16.msra.mxu1 %v1638_v52 }
 0x4ee   :  { %1640 = vmatprep.subr.bf16.mxu1 %v1802_v37 }
 0x4f0   :  { %v1136_v0 = vpop.f32.mrb[36].mxu1  ;;  %v1559_v55 = vpop.f32.mrb[48].mxu0 }
 0x4f1   :  { %v1138_v56 = vpop.f32.mrb[37].mxu1  ;;  %v1199_v57 = vpop.f32.mrb[49].mxu0 }
 0x4f2   :  { %v1140_v58 = vpop.f32.mrb[38].mxu1  ;;  %v1560_v59 = vpop.f32.mrb[50].mxu0 }
 0x4f3   :  { %v1641_v60 = vpack.c.bf16 %v1140_v58, %v1136_v0  ;;  %v1665_v61 = vpack.c.bf16 %v1560_v59, %v1559_v55  ;;  %v1142_v62 = vpop.f32.mrb[39].mxu1  ;;  %v1202_v63 = vpop.f32.mrb[51].mxu0 }
 0x4f4   :  { %v1653_v38 = vpack.c.bf16 %v1142_v62, %v1138_v56  ;;  %v1662_v1 = vpack.c.bf16 %v1202_v63, %v1199_v57 }
 0x4f5   :  { %1642 = vmatpush1.bf16.msra.mxu1 %v1641_v60 }
 0x4f6   :  { %1643 = vmatprep.subr.bf16.mxu1 %v1802_v37 }
 0x4f8   :  { %v1146_v2 = vpop.f32.mrb[40].mxu1 }
 0x4f9   :  { %v1148_v3 = vpop.f32.mrb[41].mxu1 }
 0x4fa   :  { %v1150_v4 = vpop.f32.mrb[42].mxu1 }
 0x4fb   :  { %v1644_v5 = vpack.c.bf16 %v1150_v4, %v1146_v2  ;;  %v1152_v6 = vpop.f32.mrb[43].mxu1 }
 0x4fc   :  { %v1656_v7 = vpack.c.bf16 %v1152_v6, %v1148_v3 }
 0x4fd   :  { %1645 = vmatpush1.bf16.msra.mxu1 %v1644_v5 }
 0x4fe   :  { %1646 = vmatprep.subr.bf16.mxu1 %v1802_v37 }
 0x500   :  { %v1156_v8 = vpop.f32.mrb[44].mxu1  ;;  %v1563_v9 = vpop.f32.mrb[52].mxu0 }
 0x501   :  { %v1158_v10 = vpop.f32.mrb[45].mxu1  ;;  %v1215_v11 = vpop.f32.mrb[53].mxu0 }
 0x502   :  { %v1160_v12 = vpop.f32.mrb[46].mxu1  ;;  %v1564_v13 = vpop.f32.mrb[54].mxu0 }
 0x503   :  { %v1647_v14 = vpack.c.bf16 %v1160_v12, %v1156_v8  ;;  %v1671_v15 = vpack.c.bf16 %v1564_v13, %v1563_v9  ;;  %v1162_v16 = vpop.f32.mrb[47].mxu1  ;;  %v1218_v17 = vpop.f32.mrb[55].mxu0 }
 0x504   :  { %v1659_v18 = vpack.c.bf16 %v1162_v16, %v1158_v10  ;;  %v1668_v19 = vpack.c.bf16 %v1218_v17, %v1215_v11 }
 0x505   :  { %1648 = vmatpush1.bf16.msra.mxu1 %v1647_v14 }
 0x506   :  { %1649 = vmatprep.subr.bf16.mxu1 %v1802_v37 }
 0x509   :  { %1651 = vmatpush1.bf16.msra.mxu1 %v1650_v54 }
 0x50a   :  { %1652 = vmatprep.subr.bf16.mxu1 %v1802_v37 }
 0x50d   :  { %1654 = vmatpush1.bf16.msra.mxu1 %v1653_v38 }
 0x50e   :  { %1655 = vmatprep.subr.bf16.mxu1 %v1802_v37 }
 0x511   :  { %1657 = vmatpush1.bf16.msra.mxu1 %v1656_v7 }
 0x512   :  { %1658 = vmatprep.subr.bf16.mxu1 %v1802_v37 }
 0x515   :  { %1660 = vmatpush1.bf16.msra.mxu1 %v1659_v18 }
 0x516   :  { %1661 = vmatprep.subr.bf16.mxu1 %v1802_v37 }
 0x519   :  { %1663 = vmatpush1.bf16.msra.mxu1 %v1662_v1 }
 0x51a   :  { %1664 = vmatprep.subr.bf16.mxu1 %v1802_v37 }
 0x51d   :  { %1666 = vmatpush1.bf16.msra.mxu1 %v1665_v61 }
 0x51e   :  { %1667 = vmatprep.subr.bf16.mxu1 %v1802_v37 }
 0x521   :  { %1669 = vmatpush1.bf16.msra.mxu1 %v1668_v19 }
 0x522   :  { %1670 = vmatprep.subr.bf16.mxu1 %v1802_v37  ;;  %v1448_v37 = vld [vmem:[%s2100_s3 + $0x2] ss:$0 sm:$0xff] }
 0x525   :  { %1672 = vmatpush1.bf16.msra.mxu1 %v1671_v15 }
 0x528   :  { %1303 = vmatmul.mubr.f32.vlgmr.msra.gmra.mrb[48].mxu1 %v1891_v24 }
 0x529   :  { %1450 = vmatprep.mubr.msk.f32.mxu1 %vm365_vm0, %v1896_v25 }
 0x52c   :  { %1308 = vmatmul.mubr.f32.gmra.mrb[50].mxu1 %v1905_v26 }
 0x52d   :  { %1451 = vmatprep.mubr.msk.f32.mxu1 %vm365_vm0, %v1910_v27 }
 0x530   :  { %1313 = vmatmul.mubr.f32.gmra.mrb[52].mxu1 %v1918_v28 }
 0x531   :  { %1452 = vmatprep.mubr.msk.f32.mxu1 %vm365_vm0, %v1923_v29 }
 0x534   :  { %1318 = vmatmul.mubr.f32.gmra.mrb[54].mxu1 %v1931_v30 }
 0x535   :  { %1453 = vmatprep.mubr.msk.f32.mxu1 %vm365_vm0, %v1936_v31 }
 0x538   :  { %1323 = vmatmul.mubr.f32.gmra.mrb[56].mxu1 %v1944_v32 }
 0x539   :  { %1454 = vmatprep.mubr.msk.f32.mxu1 %vm365_vm0, %v1949_v33 }
 0x53c   :  { %1328 = vmatmul.mubr.f32.gmra.mrb[58].mxu1 %v1957_v34 }
 0x53d   :  { %1455 = vmatprep.mubr.msk.f32.mxu1 %vm365_vm0, %v1962_v35 }
 0x540   :  { %1333 = vmatmul.mubr.f32.gmra.mrb[60].mxu1 %v1970_v36 }
 0x541   :  { %1456 = vmatprep.mubr.msk.f32.mxu1 %vm365_vm0, %v1975_v39 }
 0x544   :  { %1338 = vmatmul.mubr.f32.gmra.mrb[62].mxu1 %v1983_v40 }
 0x5fb   :  { %v1304_v24 = vpop.f32.mrb[48].mxu1 }
 0x5fc   :  { %v1305_v25 = vadd.f32 %v1448_v37, %v1304_v24  ;;  %v1306_v26 = vpop.f32.mrb[49].mxu1 }
 0x5fe   :  { %1343 = vst [vmem:[%s2101_s4] sm:$0xff] %v1305_v25 }
 0x5ff   :  { %v1309_v27 = vpop.f32.mrb[50].mxu1 }
 0x600   :  { %v1310_v28 = vadd.f32 %v1448_v37, %v1309_v27  ;;  %v1311_v29 = vpop.f32.mrb[51].mxu1 }
 0x602   :  { %1344 = vst [vmem:[%s2101_s4 + $0x8] sm:$0xff] %v1310_v28 }
 0x603   :  { %v1314_v30 = vpop.f32.mrb[52].mxu1 }
 0x604   :  { %v1315_v31 = vadd.f32 %v1448_v37, %v1314_v30  ;;  %v1316_v32 = vpop.f32.mrb[53].mxu1 }
 0x606   :  { %1345 = vst [vmem:[%s2101_s4 + $0x10] sm:$0xff] %v1315_v31 }
 0x607   :  { %v1319_v33 = vpop.f32.mrb[54].mxu1 }
 0x608   :  { %v1320_v34 = vadd.f32 %v1448_v37, %v1319_v33  ;;  %v1321_v35 = vpop.f32.mrb[55].mxu1 }
 0x60a   :  { %1346 = vst [vmem:[%s2101_s4 + $0x18] sm:$0xff] %v1320_v34 }
 0x60b   :  { %v1324_v36 = vpop.f32.mrb[56].mxu1 }
 0x60c   :  { %v1325_v39 = vadd.f32 %v1448_v37, %v1324_v36  ;;  %v1326_v40 = vpop.f32.mrb[57].mxu1 }
 0x60e   :  { %1347 = vst [vmem:[%s2101_s4 + $0x20] sm:$0xff] %v1325_v39 }
 0x60f   :  { %v1329_v20 = vpop.f32.mrb[58].mxu1 }
 0x610   :  { %v1330_v21 = vadd.f32 %v1448_v37, %v1329_v20  ;;  %v1331_v22 = vpop.f32.mrb[59].mxu1 }
 0x612   :  { %1348 = vst [vmem:[%s2101_s4 + $0x28] sm:$0xff] %v1330_v21 }
 0x613   :  { %v1334_v23 = vpop.f32.mrb[60].mxu1 }
 0x614   :  { %v1335_v41 = vadd.f32 %v1448_v37, %v1334_v23  ;;  %v1336_v42 = vpop.f32.mrb[61].mxu1 }
 0x616   :  { %1349 = vst [vmem:[%s2101_s4 + $0x30] sm:$0xff] %v1335_v41 }
 0x617   :  { %v1339_v43 = vpop.f32.mrb[62].mxu1 }
 0x618   :  { %v1340_v44 = vadd.f32 %v1448_v37, %v1339_v43  ;;  %v1341_v45 = vpop.f32.mrb[63].mxu1 }
 0x61a   :  { %1350 = vst [vmem:[%s2101_s4 + $0x38] sm:$0xff] %v1340_v44 }
 0x61b   :  { %1355 = vsyncpa [#allocation3], 1 }

</bundles_post_ra>
